<compile_context>
chip_gen: v5e
topology: v5e:2x2
jax: 0.10.0
libtpu: 0.0.40
codegen_flags: <defaults>
</compile_context>

<pallas_src>
import jax
import jax.numpy as jnp
from jax.experimental import pallas as pl
from jax.experimental.pallas import tpu as pltpu
import numpy as np

# ---------------- model dims (small, consistent with the module) ----------------
B = 2             # batch
S_ARG = 8         # seq len of x0 / x1
S_NG = 8          # seq len of x0_ng / x1_ng (stacking assumes same seq len; pad if not)
ARG_DIM = 128     # "arg_dim"
NG_DIM = 64       # "ng_dim"
NG_SCORE_DIM = 8  # "ng_score_dim"
N_REL = 8         # n_rel_classes
DIM = ARG_DIM + NG_DIM + NG_SCORE_DIM   # 200
H2 = DIM // 2                            # 100
H3 = DIM // 4                            # 50
HA = ARG_DIM // 2                        # 64
HN = NG_DIM // 2                         # 32
HS = NG_SCORE_DIM                        # 8

# ---------------- packed parameter-slab layout (all offsets 8/128 aligned) ----------------
P_COLS = 256
R_W1 = 0      # rows 0:640            block-diag W1 over [x0c|x1c|e0c|e1c|xng] (5 x 128-lane groups)
R_W2 = 640    # rows 640:896 c 0:128  W2 (200x100) zero-padded to 256x128
R_W3 = 640    # rows 640:768 c 128:256  W3 (100x50) zero-padded to 128x128
R_W4 = 768    # rows 768:896 c 128:256  W4 (50x8)   zero-padded to 128x128
R_B1 = 896    # row 896               b1 concat (200) padded to 256
R_B23 = 904   # row 904 c0:128 -> b2 ; c128:256 -> b3
R_B4 = 912    # row 912 c0:128        b4 with -1e30 mask in lanes 8:128 (log-softmax mask)
P_ROWS = 920
NEG_MASK = -1e30


# ---------------- the Pallas kernel (whole forward hot path) ----------------
def _attention_nn_kernel(x_ref, aux_ref, p_ref, out_ref):
    nb = out_ref.shape[0]          # batch
    ng = 4 * nb                    # stacked attention rows

    x = x_ref[...]                                    # (4B, S, 128)
    attn = aux_ref[0:ng, :]                           # (4B, 128) per-row attention vectors
    xng = aux_ref[ng:ng + nb, :]                      # (B, 128)  x_ng lane-padded

    # ----- fused attention over all four branches (softmax over the seq axis) -----
    score = jnp.sum(x * attn[:, None, :], axis=-1)            # (4B, S)
    score = score - jnp.max(score, axis=-1, keepdims=True)    # stable softmax
    e = jnp.exp(score)
    w = e * pl.reciprocal(jnp.sum(e, axis=-1, keepdims=True), approx=True)
    ctx = jnp.sum(x * w[:, :, None], axis=1)                   # (4B, 128)

    # ----- L2-normalize ng scores (padded lanes are zero; eps matches F.normalize) -----
    ss = jnp.sum(xng * xng, axis=-1, keepdims=True)
    xng_n = xng * jax.lax.rsqrt(jnp.maximum(ss, 1e-24))         # (B, 128)

    # ----- concatenated, lane-group-padded contexts: (B, 5*128) -----
    c_cat = jnp.concatenate(
        [ctx[0:nb], ctx[nb:2 * nb], ctx[2 * nb:3 * nb], ctx[3 * nb:4 * nb], xng_n],
        axis=1)                                                 # (B, 640)

    # ----- l1_* + l2 collapsed into two lane-aligned MXU dots -----
    w1 = p_ref[R_W1:R_W1 + 5 * ARG_DIM, :]                      # (640, 256) block-diagonal
    b1 = p_ref[R_B1:R_B1 + 1, :]                                # (1, 256)
    h1 = jnp.maximum(jnp.dot(c_cat, w1, preferred_element_type=jnp.float32) + b1, 0.0)

    w2 = p_ref[R_W2:R_W2 + P_COLS, 0:128]                       # (256, 128)
    b2 = p_ref[R_B23:R_B23 + 1, 0:128]
    h2 = jnp.maximum(jnp.dot(h1, w2, preferred_element_type=jnp.float32) + b2, 0.0)

    # ----- l3, l4 (padded to 128-wide), masked log_softmax -----
    w3 = p_ref[R_W3:R_W3 + 128, 128:256]                        # (128, 128)
    b3 = p_ref[R_B23:R_B23 + 1, 128:256]
    h3 = jnp.maximum(jnp.dot(h2, w3, preferred_element_type=jnp.float32) + b3, 0.0)

    w4 = p_ref[R_W4:R_W4 + 128, 128:256]                        # (128, 128)
    b4 = p_ref[R_B4:R_B4 + 1, 0:128]                            # -1e30 in lanes 8:128
    logits = jnp.dot(h3, w4, preferred_element_type=jnp.float32) + b4   # (B, 128)

    m = jnp.max(logits, axis=-1, keepdims=True)
    z = logits - m
    out_ref[...] = z - jnp.log(jnp.sum(jnp.exp(z), axis=-1, keepdims=True))


# ---------------- wrapper: stack/pad inputs, single pallas_call, slice lane padding ----------------
def attention_nn_forward(packed, x0, x1, x0_ng, x1_ng, x_ng):
    b = x0.shape[0]
    pad_ng = ARG_DIM - NG_DIM
    x0ng_p = jnp.pad(x0_ng, ((0, 0), (0, 0), (0, pad_ng)))
    x1ng_p = jnp.pad(x1_ng, ((0, 0), (0, 0), (0, pad_ng)))
    x_stacked = jnp.concatenate([x0, x1, x0ng_p, x1ng_p], axis=0)        # (4B, S, 128)

    attn_rows = jnp.repeat(packed["attn_rows"], b, axis=0)               # (4B, 128)
    xng_p = jnp.pad(x_ng, ((0, 0), (0, ARG_DIM - NG_SCORE_DIM)))         # (B, 128)
    aux = jnp.concatenate([attn_rows, xng_p], axis=0)                    # (5B, 128)

    vmem = pl.BlockSpec(memory_space=pltpu.MemorySpace.VMEM)
    out_pad = pl.pallas_call(
        _attention_nn_kernel,
        out_shape=jax.ShapeDtypeStruct((b, ARG_DIM), jnp.float32),       # lane-dense output
        in_specs=[vmem, vmem, vmem],
        out_specs=vmem,
    )(x_stacked, aux, packed["slab"])
    return out_pad[:, :N_REL]


# ---------------- deterministic parameter init (xavier uniform, zero bias) ----------------
def _xavier(key, shape):  # shape = (out_features, in_features), torch convention
    fan_out, fan_in = shape
    bound = float(np.sqrt(6.0 / (fan_in + fan_out)))
    return jax.random.uniform(key, shape, jnp.float32, -bound, bound)


def make_params(key):
    ks = jax.random.split(key, 10)

    def t(w):  # torch stores (out, in); reference/packer want (in, out)
        return jnp.transpose(w)

    def zb(n):
        return jnp.zeros((n,), jnp.float32)

    return {
        "arg_attn": _xavier(ks[0], (2, ARG_DIM)),
        "ng_attn": _xavier(ks[1], (2, NG_DIM)),
        "w10": t(_xavier(ks[2], (HA, ARG_DIM))), "b10": zb(HA),
        "w11": t(_xavier(ks[3], (HA, ARG_DIM))), "b11": zb(HA),
        "w1e0": t(_xavier(ks[4], (HN, NG_DIM))), "b1e0": zb(HN),
        "w1e1": t(_xavier(ks[5], (HN, NG_DIM))), "b1e1": zb(HN),
        "w1s": t(_xavier(ks[6], (HS, NG_SCORE_DIM))), "b1s": zb(HS),
        "w2": t(_xavier(ks[7], (H2, DIM))), "b2": zb(H2),
        "w3": t(_xavier(ks[8], (H3, H2))), "b3": zb(H3),
        "w4": t(_xavier(ks[9], (N_REL, H3))), "b4": zb(N_REL),
    }


def pack_params(p):
    """Build the single (920, 256) f32 parameter slab + stacked attention vectors (host-side, once)."""
    slab = np.zeros((P_ROWS, P_COLS), np.float32)
    # Block-diagonal W1: input is [x0c(128) | x1c(128) | e0c pad(128) | e1c pad(128) | xng pad(128)]
    slab[0:ARG_DIM, 0:HA] = np.asarray(p["w10"])
    slab[ARG_DIM:2 * ARG_DIM, HA:2 * HA] = np.asarray(p["w11"])
    slab[2 * ARG_DIM:2 * ARG_DIM + NG_DIM, 2 * HA:2 * HA + HN] = np.asarray(p["w1e0"])
    slab[3 * ARG_DIM:3 * ARG_DIM + NG_DIM, 2 * HA + HN:2 * HA + 2 * HN] = np.asarray(p["w1e1"])
    slab[4 * ARG_DIM:4 * ARG_DIM + HS, DIM - HS:DIM] = np.asarray(p["w1s"])
    # W2 / W3 / W4 (zero-padded to lane/sublane-aligned blocks)
    slab[R_W2:R_W2 + DIM, 0:H2] = np.asarray(p["w2"])
    slab[R_W3:R_W3 + H2, 128:128 + H3] = np.asarray(p["w3"])
    slab[R_W4:R_W4 + H3, 128:128 + N_REL] = np.asarray(p["w4"])
    # Biases (b1 is the concat of the five first-layer biases in torch concat order)
    slab[R_B1, 0:HA] = np.asarray(p["b10"])
    slab[R_B1, HA:2 * HA] = np.asarray(p["b11"])
    slab[R_B1, 2 * HA:2 * HA + HN] = np.asarray(p["b1e0"])
    slab[R_B1, 2 * HA + HN:2 * HA + 2 * HN] = np.asarray(p["b1e1"])
    slab[R_B1, DIM - HS:DIM] = np.asarray(p["b1s"])
    slab[R_B23, 0:H2] = np.asarray(p["b2"])
    slab[R_B23, 128:128 + H3] = np.asarray(p["b3"])
    slab[R_B4, 0:N_REL] = np.asarray(p["b4"])
    slab[R_B4, N_REL:128] = NEG_MASK        # mask the padded class lanes for log_softmax

    attn_rows = np.zeros((4, ARG_DIM), np.float32)
    attn_rows[0] = np.asarray(p["arg_attn"][0])
    attn_rows[1] = np.asarray(p["arg_attn"][1])
    attn_rows[2, :NG_DIM] = np.asarray(p["ng_attn"][0])
    attn_rows[3, :NG_DIM] = np.asarray(p["ng_attn"][1])
    return {"slab": jnp.asarray(slab), "attn_rows": jnp.asarray(attn_rows)}


# ---------------- pure-JAX reference (mirrors the torch forward) ----------------
def reference_forward(p, x0, x1, x0_ng, x1_ng, x_ng):
    def attend(x, attn_vec):
        s = jnp.einsum("bsd,d->bs", x, attn_vec)
        w = jax.nn.softmax(s, axis=1)
        return jnp.sum(x * w[:, :, None], axis=1)

    def lin(x, w, b):
        return jnp.dot(x, w, preferred_element_type=jnp.float32) + b

    o0 = jax.nn.relu(lin(attend(x0, p["arg_attn"][0]), p["w10"], p["b10"]))
    o1 = jax.nn.relu(lin(attend(x1, p["arg_attn"][1]), p["w11"], p["b11"]))
    oe0 = jax.nn.relu(lin(attend(x0_ng, p["ng_attn"][0]), p["w1e0"], p["b1e0"]))
    oe1 = jax.nn.relu(lin(attend(x1_ng, p["ng_attn"][1]), p["w1e1"], p["b1e1"]))
    xn = x_ng / jnp.maximum(jnp.linalg.norm(x_ng, axis=1, keepdims=True), 1e-12)
    os_ = jax.nn.relu(lin(xn, p["w1s"], p["b1s"]))
    out1 = jnp.concatenate([o0, o1, oe0, oe1, os_], axis=1)
    out2 = jax.nn.relu(lin(out1, p["w2"], p["b2"]))
    out3 = jax.nn.relu(lin(out2, p["w3"], p["b3"]))
    return jax.nn.log_softmax(lin(out3, p["w4"], p["b4"]), axis=1)


if __name__ == "__main__":
    key = jax.random.PRNGKey(0)
    kp, k0, k1, k2, k3, k4 = jax.random.split(key, 6)
    params = make_params(kp)
    packed = pack_params(params)

    x0 = jax.random.normal(k0, (B, S_ARG, ARG_DIM), jnp.float32)
    x1 = jax.random.normal(k1, (B, S_ARG, ARG_DIM), jnp.float32)
    x0_ng = jax.random.normal(k2, (B, S_NG, NG_DIM), jnp.float32)
    x1_ng = jax.random.normal(k3, (B, S_NG, NG_DIM), jnp.float32)
    x_ng = jax.random.normal(k4, (B, NG_SCORE_DIM), jnp.float32)

    fwd = jax.jit(attention_nn_forward)
    out = jax.block_until_ready(fwd(packed, x0, x1, x0_ng, x1_ng, x_ng))
    ref = jax.block_until_ready(reference_forward(params, x0, x1, x0_ng, x1_ng, x_ng))

    assert out.shape == (B, N_REL)
    np.testing.assert_allclose(np.asarray(out), np.asarray(ref), rtol=2e-2, atol=2e-2)
    print("KERNEL_OK")
</pallas_src>

<mosaic_0001>
module attributes {stable_mosaic.version = 11 : i64} {
  func.func @_attention_nn_kernel(%arg0: memref<8x8x128xf32, #tpu.memory_space<vmem>>, %arg1: memref<10x128xf32, #tpu.memory_space<vmem>>, %arg2: memref<920x256xf32, #tpu.memory_space<vmem>>, %arg3: memref<2x128xf32, #tpu.memory_space<vmem>>) attributes {dimension_semantics = [], scalar_prefetch = 0 : i64, scratch_operands = 0 : i64, tpu.core_type = #tpu.core_type<tc>} {
    %c0 = arith.constant 0 : index
    %c0_0 = arith.constant 0 : index
    %c0_1 = arith.constant 0 : index
    %0 = vector.load %arg0[%c0, %c0_0, %c0_1] : memref<8x8x128xf32, #tpu.memory_space<vmem>>, vector<8x8x128xf32>
    %c0_2 = arith.constant 0 : index
    %c0_3 = arith.constant 0 : index
    %1 = vector.load %arg1[%c0_2, %c0_3] : memref<10x128xf32, #tpu.memory_space<vmem>>, vector<8x128xf32>
    %c8 = arith.constant 8 : index
    %c0_4 = arith.constant 0 : index
    %2 = vector.load %arg1[%c8, %c0_4] : memref<10x128xf32, #tpu.memory_space<vmem>>, vector<2x128xf32>
    %3 = vector.shape_cast %1 : vector<8x128xf32> to vector<8x1x128xf32>
    %4 = vector.broadcast %3 : vector<8x1x128xf32> to vector<8x8x128xf32>
    %5 = arith.mulf %0, %4 : vector<8x8x128xf32>
    %cst = arith.constant dense<0.000000e+00> : vector<8x8xf32>
    %6 = vector.multi_reduction <add>, %5, %cst [2] : vector<8x8x128xf32> to vector<8x8xf32>
    %cst_5 = arith.constant dense<0xFF800000> : vector<8xf32>
    %7 = vector.multi_reduction <maximumf>, %6, %cst_5 [1] : vector<8x8xf32> to vector<8xf32>
    %8 = vector.shape_cast %7 : vector<8xf32> to vector<8x1xf32>
    %9 = vector.broadcast %8 : vector<8x1xf32> to vector<8x8xf32>
    %10 = arith.subf %6, %9 : vector<8x8xf32>
    %11 = math.exp %10 : vector<8x8xf32>
    %cst_6 = arith.constant dense<0.000000e+00> : vector<8xf32>
    %12 = vector.multi_reduction <add>, %11, %cst_6 [1] : vector<8x8xf32> to vector<8xf32>
    %13 = vector.shape_cast %12 : vector<8xf32> to vector<8x1xf32>
    %14 = tpu.reciprocal %13 {approx = true} : vector<8x1xf32> -> vector<8x1xf32>
    %15 = vector.broadcast %14 : vector<8x1xf32> to vector<8x8xf32>
    %16 = arith.mulf %11, %15 : vector<8x8xf32>
    %17 = vector.shape_cast %16 : vector<8x8xf32> to vector<8x8x1xf32>
    %18 = vector.broadcast %17 : vector<8x8x1xf32> to vector<8x8x128xf32>
    %19 = arith.mulf %0, %18 : vector<8x8x128xf32>
    %cst_7 = arith.constant dense<0.000000e+00> : vector<8x128xf32>
    %20 = vector.multi_reduction <add>, %19, %cst_7 [1] : vector<8x8x128xf32> to vector<8x128xf32>
    %21 = arith.mulf %2, %2 : vector<2x128xf32>
    %cst_8 = arith.constant dense<0.000000e+00> : vector<2xf32>
    %22 = vector.multi_reduction <add>, %21, %cst_8 [1] : vector<2x128xf32> to vector<2xf32>
    %23 = vector.shape_cast %22 : vector<2xf32> to vector<2x1xf32>
    %cst_9 = arith.constant 1.000000e-24 : f32
    %24 = vector.broadcast %cst_9 : f32 to vector<2x1xf32>
    %25 = arith.maximumf %23, %24 : vector<2x1xf32>
    %26 = math.rsqrt %25 : vector<2x1xf32>
    %27 = vector.broadcast %26 : vector<2x1xf32> to vector<2x128xf32>
    %28 = arith.mulf %2, %27 : vector<2x128xf32>
    %29 = vector.extract_strided_slice %20 {offsets = [0, 0], sizes = [2, 128], strides = [1, 1]} : vector<8x128xf32> to vector<2x128xf32>
    %30 = vector.extract_strided_slice %20 {offsets = [2, 0], sizes = [2, 128], strides = [1, 1]} : vector<8x128xf32> to vector<2x128xf32>
    %31 = vector.extract_strided_slice %20 {offsets = [4, 0], sizes = [2, 128], strides = [1, 1]} : vector<8x128xf32> to vector<2x128xf32>
    %32 = vector.extract_strided_slice %20 {offsets = [6, 0], sizes = [2, 128], strides = [1, 1]} : vector<8x128xf32> to vector<2x128xf32>
    %33 = tpu.concatenate %29, %30, %31, %32, %28 in 1 : vector<2x128xf32>, vector<2x128xf32>, vector<2x128xf32>, vector<2x128xf32>, vector<2x128xf32> -> vector<2x640xf32>
    %c0_10 = arith.constant 0 : index
    %c0_11 = arith.constant 0 : index
    %34 = vector.load %arg2[%c0_10, %c0_11] : memref<920x256xf32, #tpu.memory_space<vmem>>, vector<640x256xf32>
    %c896 = arith.constant 896 : index
    %c0_12 = arith.constant 0 : index
    %35 = vector.load %arg2[%c896, %c0_12] : memref<920x256xf32, #tpu.memory_space<vmem>>, vector<1x256xf32>
    %cst_13 = arith.constant dense<0.000000e+00> : vector<2x256xf32>
    %36 = tpu.matmul %33, %34, %cst_13 {dimension_numbers = #tpu.dot_dimension_numbers<[1], [0], [0], [1], [0, 0, 1, 1], [], []>} : vector<2x640xf32>, vector<640x256xf32>, vector<2x256xf32> -> vector<2x256xf32>
    %37 = vector.broadcast %35 : vector<1x256xf32> to vector<2x256xf32>
    %38 = arith.addf %36, %37 : vector<2x256xf32>
    %cst_14 = arith.constant 0.000000e+00 : f32
    %39 = vector.broadcast %cst_14 : f32 to vector<2x256xf32>
    %40 = arith.maximumf %38, %39 : vector<2x256xf32>
    %c640 = arith.constant 640 : index
    %c0_15 = arith.constant 0 : index
    %41 = vector.load %arg2[%c640, %c0_15] : memref<920x256xf32, #tpu.memory_space<vmem>>, vector<256x128xf32>
    %c904 = arith.constant 904 : index
    %c0_16 = arith.constant 0 : index
    %42 = vector.load %arg2[%c904, %c0_16] : memref<920x256xf32, #tpu.memory_space<vmem>>, vector<1x128xf32>
    %cst_17 = arith.constant dense<0.000000e+00> : vector<2x128xf32>
    %43 = tpu.matmul %40, %41, %cst_17 {dimension_numbers = #tpu.dot_dimension_numbers<[1], [0], [0], [1], [0, 0, 1, 1], [], []>} : vector<2x256xf32>, vector<256x128xf32>, vector<2x128xf32> -> vector<2x128xf32>
    %44 = vector.broadcast %42 : vector<1x128xf32> to vector<2x128xf32>
    %45 = arith.addf %43, %44 : vector<2x128xf32>
    %cst_18 = arith.constant 0.000000e+00 : f32
    %46 = vector.broadcast %cst_18 : f32 to vector<2x128xf32>
    %47 = arith.maximumf %45, %46 : vector<2x128xf32>
    %c640_19 = arith.constant 640 : index
    %c128 = arith.constant 128 : index
    %48 = vector.load %arg2[%c640_19, %c128] : memref<920x256xf32, #tpu.memory_space<vmem>>, vector<128x128xf32>
    %c904_20 = arith.constant 904 : index
    %c128_21 = arith.constant 128 : index
    %49 = vector.load %arg2[%c904_20, %c128_21] : memref<920x256xf32, #tpu.memory_space<vmem>>, vector<1x128xf32>
    %cst_22 = arith.constant dense<0.000000e+00> : vector<2x128xf32>
    %50 = tpu.matmul %47, %48, %cst_22 {dimension_numbers = #tpu.dot_dimension_numbers<[1], [0], [0], [1], [0, 0, 1, 1], [], []>} : vector<2x128xf32>, vector<128x128xf32>, vector<2x128xf32> -> vector<2x128xf32>
    %51 = vector.broadcast %49 : vector<1x128xf32> to vector<2x128xf32>
    %52 = arith.addf %50, %51 : vector<2x128xf32>
    %cst_23 = arith.constant 0.000000e+00 : f32
    %53 = vector.broadcast %cst_23 : f32 to vector<2x128xf32>
    %54 = arith.maximumf %52, %53 : vector<2x128xf32>
    %c768 = arith.constant 768 : index
    %c128_24 = arith.constant 128 : index
    %55 = vector.load %arg2[%c768, %c128_24] : memref<920x256xf32, #tpu.memory_space<vmem>>, vector<128x128xf32>
    %c912 = arith.constant 912 : index
    %c0_25 = arith.constant 0 : index
    %56 = vector.load %arg2[%c912, %c0_25] : memref<920x256xf32, #tpu.memory_space<vmem>>, vector<1x128xf32>
    %cst_26 = arith.constant dense<0.000000e+00> : vector<2x128xf32>
    %57 = tpu.matmul %54, %55, %cst_26 {dimension_numbers = #tpu.dot_dimension_numbers<[1], [0], [0], [1], [0, 0, 1, 1], [], []>} : vector<2x128xf32>, vector<128x128xf32>, vector<2x128xf32> -> vector<2x128xf32>
    %58 = vector.broadcast %56 : vector<1x128xf32> to vector<2x128xf32>
    %59 = arith.addf %57, %58 : vector<2x128xf32>
    %cst_27 = arith.constant dense<0xFF800000> : vector<2xf32>
    %60 = vector.multi_reduction <maximumf>, %59, %cst_27 [1] : vector<2x128xf32> to vector<2xf32>
    %61 = vector.shape_cast %60 : vector<2xf32> to vector<2x1xf32>
    %62 = vector.broadcast %61 : vector<2x1xf32> to vector<2x128xf32>
    %63 = arith.subf %59, %62 : vector<2x128xf32>
    %64 = math.exp %63 : vector<2x128xf32>
    %cst_28 = arith.constant dense<0.000000e+00> : vector<2xf32>
    %65 = vector.multi_reduction <add>, %64, %cst_28 [1] : vector<2x128xf32> to vector<2xf32>
    %66 = vector.shape_cast %65 : vector<2xf32> to vector<2x1xf32>
    %67 = math.log %66 : vector<2x1xf32>
    %68 = vector.broadcast %67 : vector<2x1xf32> to vector<2x128xf32>
    %69 = arith.subf %63, %68 : vector<2x128xf32>
    %c0_29 = arith.constant 0 : index
    %c0_30 = arith.constant 0 : index
    %70 = vector.load %arg3[%c0_29, %c0_30] : memref<2x128xf32, #tpu.memory_space<vmem>>, vector<2x128xf32>
    tpu.vector_store %arg3[%c0_29, %c0_30], %69 {strides = array<i32>} : memref<2x128xf32, #tpu.memory_space<vmem>>, vector<2x128xf32>,
    return
  }
}

</mosaic_0001>

<bundles_post_ra>
// kernel: attention_nn_forward.1
= control target key start
LH: loop header
LB: loop body
LE: loop exit
PB: predicated region body
PF: predicated region fallthrough
CT: control target
= control target key end

     0   :  { %8 = vsyncpa [#allocation3], 0  ;;  %s1156_s0 = inlined_call_operand.vmem [shape: f32[8,8,128], index: 0, kind: input, shape index: {}]   ;;  %s1157_s1 = inlined_call_operand.vmem [shape: f32[10,128], index: 1, kind: input, shape index: {}]   ;;  %s1158_s2 = inlined_call_operand.hbm [shape: f32[920,256], index: 2, kind: input, shape index: {}]   ;;  %s1159_s3 = inlined_call_operand.hbm [shape: f32[2,128], index: 3, kind: output, shape index: {}]  }
   0x1   :  { %9 = vsyncpa [#allocation4], 0  ;;  %s18_s14 = sshll.u32 %s1158_s2, 4  ;;  %s1005_s15 = smov [#allocation2]   ;;  %s19_s14 = int_to_ptr.hbm [resolvable:$true] %s18_s14 }
   0x2   :  { %s20_s16 = sshll.u32 %s1005_s15, 4  ;;  %s1006_s17 = smov 256   ;;  %s21_s16 = int_to_ptr.vmem [resolvable:$true] %s20_s16 }
   0x3   :  { %s1007_s18 = smov 16  }
   0x4   :  { %26 = dma.hbm_to_vmem [thread:$0]  %s19_s14, 29440, %s21_s16, [#allocation3], %s1006_s17, %s1006_s17, %s1007_s18  }
   0x5   :  { %1001 = dma.done.wait [#allocation3], 29440  }
   0x6   :  { %1002 = vsyncadd [#allocation3], 4294937856  ;;  %v1036_v0 = vld [vmem:[%s1156_s0] sm:$0xff]  ;;  %v1044_v6 = vld [vmem:[%s1156_s0 + $0x10] sm:$0xff]  ;;  %v97_v33 = vlaneseq  ;;  %vm107_vm0 = vcmask 1041409   ;;  %vm109_vm1 = vcmask 1042434  }
   0x7   :  { %v39_v1 = vld [vmem:[%s1157_s1] sm:$0xff]  ;;  %v1057_v16 = vld [vmem:[%s1156_s0 + $0x8] sm:$0xff]  ;;  %v1062_v19 = vld [vmem:[%s1156_s0 + $0x18] sm:$0xff]  ;;  %vm111_vm2 = vcmask 1043459   ;;  %vm113_vm3 = vcmask 1044484   ;;  %vm115_vm4 = vcmask 1045509  }
   0x8   :  { %v49_v2 = vperm.slane %v39_v1, 0  ;;  %v43_v3 = vrot.slane %v39_v1, 2  ;;  %v45_v4 = vrot.slane %v39_v1, 4  ;;  %v42_v5 = vrot.slane %v39_v1, 1  ;;  %v1049_v7 = vld [vmem:[%s1156_s0 + $0x20] sm:$0xff]  ;;  %v1067_v20 = vld [vmem:[%s1156_s0 + $0x28] sm:$0xff] }
   0x9   :  { %v44_v8 = vrot.slane %v39_v1, 3  ;;  %v46_v12 = vrot.slane %v39_v1, 5  ;;  %v47_v22 = vrot.slane %v39_v1, 6  ;;  %v48_v25 = vrot.slane %v39_v1, 7  ;;  %v1075_v27 = vld [vmem:[%s1156_s0 + $0x30] sm:$0xff]  ;;  %v1080_v29 = vld [vmem:[%s1156_s0 + $0x38] sm:$0xff] }
   0xa   :  { %v65_v9 = vmul.f32 %v49_v2, %v1036_v0  ;;  %v51_v10 = vperm.slane %v43_v3, 0  ;;  %v53_v11 = vperm.slane %v45_v4, 0  ;;  %v50_v15 = vperm.slane %v42_v5, 0  ;;  %s911_s13 = sshll.u32 %s1159_s3, 4  ;;  %s912_s13 = int_to_ptr.hbm [resolvable:$true] %s911_s13 }
   0xb   :  { %v52_v17 = vperm.slane %v44_v8, 0  ;;  %v54_v18 = vperm.slane %v46_v12, 0  ;;  %v55_v26 = vperm.slane %v47_v22, 0  ;;  %v56_v28 = vperm.slane %v48_v25, 0 }
   0xc   :  { %73 = vadd.xlane.f32.xlu0 %v65_v9  ;;  %v67_v13 = vmul.f32 %v51_v10, %v1044_v6  ;;  %v69_v14 = vmul.f32 %v53_v11, %v1049_v7  ;;  %v66_v21 = vmul.f32 %v50_v15, %v1057_v16  ;;  %v1084_v36 = vand.u32 127, %v97_v33 }
   0xd   :  { %v68_v23 = vmul.f32 %v52_v17, %v1062_v19  ;;  %v70_v24 = vmul.f32 %v54_v18, %v1067_v20  ;;  %v71_v30 = vmul.f32 %v55_v26, %v1075_v27  ;;  %v72_v31 = vmul.f32 %v56_v28, %v1080_v29 }
   0xe   :  { %77 = vadd.xlane.f32.xlu1 %v67_v13  ;;  %81 = vadd.xlane.f32.xlu2 %v69_v14  ;;  %vm117_vm5 = vcmask 1046534   ;;  %vm119_vm6 = vcmask 1047559   ;;  %vm122_vm7 = vcmask 64512   ;;  %v1008_v58 = vmov 0  }
   0xf   :  { %928 = vset.pattern.permute.xlu2 %v1008_v58  ;;  %927 = vset.pattern.permute.xlu1 %v1008_v58  ;;  %vm341_vm8 = vcmask 1041408  }
  0x10   :  { %926 = vset.pattern.permute.xlu0 %v1008_v58 }
  0x14   :  { %75 = vadd.xlane.f32.xlu0 %v66_v21 }
  0x16   :  { %79 = vadd.xlane.f32.xlu1 %v68_v23  ;;  %83 = vadd.xlane.f32.xlu2 %v70_v24 }
  0x1c   :  { %85 = vadd.xlane.f32.xlu0 %v71_v30 }
  0x1e   :  { %87 = vadd.xlane.f32.xlu1 %v72_v31 }
  0x7f   :  { %v74_v32 = vpop.xlane.xlu0 %73 }
  0x80   :  { %v99_v38 = vperm.slane %v74_v32, %v1084_v36 }
  0x81   :  { %v78_v34 = vpop.xlane.xlu1 %77  ;;  %v82_v35 = vpop.xlane.xlu2 %81 }
  0x82   :  { %v101_v40 = vperm.slane %v78_v34, %v1084_v36  ;;  %v103_v46 = vperm.slane %v82_v35, %v1084_v36 }
  0x87   :  { %v76_v37 = vpop.xlane.xlu0 %75 }
  0x88   :  { %v100_v39 = vperm.slane %v76_v37, %v1084_v36 }
  0x89   :  { %v80_v41 = vpop.xlane.xlu1 %79  ;;  %v84_v44 = vpop.xlane.xlu2 %83 }
  0x8a   :  { %v108_v42 = vsel %vm107_vm0, %v100_v39, %v99_v38  ;;  %v102_v43 = vperm.slane %v80_v41, %v1084_v36  ;;  %v104_v48 = vperm.slane %v84_v44, %v1084_v36 }
  0x8b   :  { %v110_v45 = vsel %vm109_vm1, %v101_v40, %v108_v42 }
  0x8c   :  { %v112_v47 = vsel %vm111_vm2, %v102_v43, %v110_v45 }
  0x8d   :  { %v114_v49 = vsel %vm113_vm3, %v103_v46, %v112_v47 }
  0x8e   :  { %v116_v53 = vsel %vm115_vm4, %v104_v48, %v114_v49 }
  0x8f   :  { %v86_v50 = vpop.xlane.xlu0 %85 }
  0x90   :  { %v105_v51 = vperm.slane %v86_v50, %v1084_v36 }
  0x91   :  { %v88_v52 = vpop.xlane.xlu1 %87 }
  0x92   :  { %v106_v54 = vperm.slane %v88_v52, %v1084_v36  ;;  %v118_v55 = vsel %vm117_vm5, %v105_v51, %v116_v53 }
  0x94   :  { %v120_v56 = vsel %vm119_vm6, %v106_v54, %v118_v55 }
  0x95   :  { %v123_v57 = vsel %vm122_vm7, %v120_v56, -inf }
  0x96   :  { %124 = vmax.xlane.f32.xlu2 %v123_v57 }
 0x109   :  { %v125_v59 = vpop.xlane.xlu2 %124 }
 0x10a   :  { %v129_v60 = vperm.slane %v125_v59, 2  ;;  %v128_v61 = vperm.slane %v125_v59, 1  ;;  %v127_v62 = vperm.slane %v125_v59, 0  ;;  %v130_v3 = vperm.slane %v125_v59, 3 }
 0x10b   :  { %v131_v4 = vperm.slane %v125_v59, 4  ;;  %v134_v5 = vperm.slane %v125_v59, 7  ;;  %v132_v15 = vperm.slane %v125_v59, 5  ;;  %v133_v18 = vperm.slane %v125_v59, 6 }
 0x10c   :  { %v145_v63 = vsub.f32 %v78_v34, %v129_v60  ;;  %v144_v1 = vsub.f32 %v76_v37, %v128_v61  ;;  %v143_v2 = vsub.f32 %v74_v32, %v127_v62  ;;  %v146_v11 = vsub.f32 %v80_v41, %v130_v3 }
 0x10d   :  { %v147_v12 = vsub.f32 %v82_v35, %v131_v4  ;;  %v150_v13 = vsub.f32 %v88_v52, %v134_v5  ;;  %v148_v25 = vsub.f32 %v84_v44, %v132_v15  ;;  %v149_v26 = vsub.f32 %v86_v50, %v133_v18  ;;  %v435_v18 = vld [vmem:[#allocation2 + $0x1f0] sm:$0xff] }
 0x10e   :  { %v155_v8 = vmul.f32 1.442695, %v145_v63  ;;  %v153_v9 = vmul.f32 1.442695, %v144_v1  ;;  %v151_v10 = vmul.f32 1.442695, %v143_v2  ;;  %560 = vmatpush.msra.mxu1 %v435_v18 }
 0x10f   :  { %v157_v14 = vmul.f32 1.442695, %v146_v11  ;;  %v159_v17 = vmul.f32 1.442695, %v147_v12  ;;  %v165_v22 = vmul.f32 1.442695, %v150_v13 }
 0x110   :  { %929 = vpow2.f32 %v155_v8  ;;  %v161_v28 = vmul.f32 1.442695, %v148_v25  ;;  %v163_v30 = vmul.f32 1.442695, %v149_v26  ;;  %v463_v25 = vld [vmem:[#allocation2 + $0x2d0] sm:$0xff]  ;;  %v429_v26 = vld [vmem:[#allocation2 + $0x1c0] sm:$0xff] }
 0x111   :  { %931 = vpow2.f32 %v153_v9  ;;  %v400_v18 = vld [vmem:[#allocation2 + $0xd8] sm:$0xff] }
 0x112   :  { %933 = vpow2.f32 %v151_v10 }
 0x113   :  { %935 = vpow2.f32 %v157_v14 }
 0x114   :  { %937 = vpow2.f32 %v159_v17 }
 0x115   :  { %939 = vpow2.f32 %v165_v22  ;;  %v433_v22 = vld [vmem:[#allocation2 + $0x1e0] sm:$0xff] }
 0x116   :  { %v1102_v21 = vpop.eup %929  ;;  %941 = vpow2.f32 %v161_v28  ;;  %561 = vmatpush.msra.mxu1 %v433_v22  ;;  %v403_v28 = vld [vmem:[#allocation2 + $0xf0] sm:$0xff] }
 0x117   :  { %v932_v23 = vpop.eup %931  ;;  %182 = vperm.xlu2 %928, %v1102_v21   ;;  %943 = vpow2.f32 %v163_v30  ;;  %v461_v30 = vld [vmem:[#allocation2 + $0x2c0] sm:$0xff]  ;;  %540 = vmatpush.msra.mxu0 %v403_v28  ;;  %v439_v22 = vld [vmem:[#allocation2 + $0x210] sm:$0xff] }
 0x118   :  { %v934_v24 = vpop.eup %933  ;;  %179 = vperm.xlu1 %927, %v932_v23   ;;  %v379_v28 = vld [vmem:[#allocation2 + $0x30] sm:$0xff] }
 0x119   :  { %176 = vperm.xlu0 %926, %v934_v24   ;;  %v936_v31 = vpop.eup %935 }
 0x11a   :  { %v938_v32 = vpop.eup %937 }
 0x11b   :  { %v940_v33 = vpop.eup %939 }
 0x11c   :  { %v942_v34 = vpop.eup %941 }
 0x11d   :  { %v944_v35 = vpop.eup %943 }
 0x11f   :  { %185 = vperm.xlu2 %928, %v936_v31  }
 0x120   :  { %188 = vperm.xlu1 %927, %v938_v32  }
 0x121   :  { %197 = vperm.xlu0 %926, %v940_v33  }
 0x127   :  { %191 = vperm.xlu2 %928, %v942_v34  }
 0x128   :  { %194 = vperm.xlu1 %927, %v944_v35  }
 0x171   :  { %v183_v37 = vpop.permute.xlu2 %182 }
 0x172   :  { %v201_v45 = vperm.slane %v183_v37, %v1084_v36  ;;  %v459_v37 = vld [vmem:[#allocation2 + $0x2b0] sm:$0xff] }
 0x179   :  { %v186_v40 = vpop.permute.xlu2 %185 }
 0x17a   :  { %v202_v48 = vperm.slane %v186_v40, %v1084_v36  ;;  %v397_v40 = vld [vmem:[#allocation2 + $0xc0] sm:$0xff] }
 0x181   :  { %v192_v49 = vpop.permute.xlu2 %191 }
 0x182   :  { %v204_v53 = vperm.slane %v192_v49, %v1084_v36  ;;  %v453_v49 = vld [vmem:[#allocation2 + $0x280] sm:$0xff] }
 0x18a   :  { %v180_v38 = vpop.permute.xlu1 %179 }
 0x18b   :  { %v177_v39 = vpop.permute.xlu0 %176  ;;  %v200_v41 = vperm.slane %v180_v38, %v1084_v36  ;;  %v495_v38 = vld [vmem:[#allocation2 + $0x3d0] sm:$0xff] }
 0x18c   :  { %v199_v42 = vperm.slane %v177_v39, %v1084_v36  ;;  %v425_v39 = vld [vmem:[#allocation2 + $0x1a0] sm:$0xff] }
 0x18e   :  { %v207_v43 = vsel %vm107_vm0, %v200_v41, %v199_v42  ;;  %v457_v41 = vld [vmem:[#allocation2 + $0x2a0] sm:$0xff] }
 0x18f   :  { %v208_v46 = vsel %vm109_vm1, %v201_v45, %v207_v43  ;;  %v493_v42 = vld [vmem:[#allocation2 + $0x3c0] sm:$0xff]  ;;  %v423_v43 = vld [vmem:[#allocation2 + $0x190] sm:$0xff] }
 0x190   :  { %v209_v50 = vsel %vm111_vm2, %v202_v48, %v208_v46  ;;  %v455_v45 = vld [vmem:[#allocation2 + $0x290] sm:$0xff]  ;;  %v393_v48 = vld [vmem:[#allocation2 + $0xa0] sm:$0xff] }
 0x191   :  { %v491_v46 = vld [vmem:[#allocation2 + $0x3b0] sm:$0xff] }
 0x192   :  { %v189_v44 = vpop.permute.xlu1 %188 }
 0x193   :  { %v203_v47 = vperm.slane %v189_v44, %v1084_v36  ;;  %v198_v52 = vpop.permute.xlu0 %197  ;;  %v395_v44 = vld [vmem:[#allocation2 + $0xb0] sm:$0xff] }
 0x194   :  { %v206_v56 = vperm.slane %v198_v52, %v1084_v36  ;;  %v391_v52 = vld [vmem:[#allocation2 + $0x90] sm:$0xff] }
 0x195   :  { %v210_v51 = vsel %vm113_vm3, %v203_v47, %v209_v50  ;;  %v421_v47 = vld [vmem:[#allocation2 + $0x180] sm:$0xff] }
 0x196   :  { %v211_v57 = vsel %vm115_vm4, %v204_v53, %v210_v51  ;;  %v489_v50 = vld [vmem:[#allocation2 + $0x3a0] sm:$0xff]  ;;  %v419_v51 = vld [vmem:[#allocation2 + $0x170] sm:$0xff] }
 0x197   :  { %v451_v53 = vld [vmem:[#allocation2 + $0x270] sm:$0xff] }
 0x19a   :  { %v195_v54 = vpop.permute.xlu1 %194 }
 0x19b   :  { %v205_v55 = vperm.slane %v195_v54, %v1084_v36  ;;  %v487_v54 = vld [vmem:[#allocation2 + $0x390] sm:$0xff] }
 0x19d   :  { %v212_v58 = vsel %vm117_vm5, %v205_v55, %v211_v57  ;;  %v417_v55 = vld [vmem:[#allocation2 + $0x160] sm:$0xff] }
 0x19e   :  { %v213_v59 = vsel %vm119_vm6, %v206_v56, %v212_v58  ;;  %v389_v56 = vld [vmem:[#allocation2 + $0x80] sm:$0xff] }
 0x19f   :  { %v215_v60 = vsel %vm122_vm7, %v213_v59, 0.0  ;;  %v449_v57 = vld [vmem:[#allocation2 + $0x260] sm:$0xff]  ;;  %v415_v59 = vld [vmem:[#allocation2 + $0x150] sm:$0xff] }
 0x1a0   :  { %216 = vadd.xlane.f32.xlu2 %v215_v60  ;;  %v485_v58 = vld [vmem:[#allocation2 + $0x380] sm:$0xff]  ;;  %v447_v60 = vld [vmem:[#allocation2 + $0x250] sm:$0xff] }
 0x213   :  { %v217_v61 = vpop.xlane.xlu2 %216 }
 0x214   :  { %945 = vrcp.f32 %v217_v61  ;;  %v413_v61 = vld [vmem:[#allocation2 + $0x140] sm:$0xff] }
 0x21a   :  { %v946_v62 = vpop.eup %945 }
 0x21b   :  { %v221_v63 = vperm.slane %v946_v62, 1  ;;  %v220_v1 = vperm.slane %v946_v62, 0  ;;  %v223_v4 = vperm.slane %v946_v62, 3  ;;  %v222_v36 = vperm.slane %v946_v62, 2 }
 0x21c   :  { %v225_v9 = vperm.slane %v946_v62, 5  ;;  %v224_v10 = vperm.slane %v946_v62, 4  ;;  %v227_v13 = vperm.slane %v946_v62, 7  ;;  %v226_v14 = vperm.slane %v946_v62, 6  ;;  %v445_v62 = vld [vmem:[#allocation2 + $0x240] sm:$0xff] }
 0x21d   :  { %v237_v2 = vmul.f32 %v932_v23, %v221_v63  ;;  %v236_v3 = vmul.f32 %v934_v24, %v220_v1  ;;  %v239_v5 = vmul.f32 %v936_v31, %v223_v4  ;;  %v238_v8 = vmul.f32 %v1102_v21, %v222_v36  ;;  %v467_v23 = vld [vmem:[#allocation2 + $0x2f0] sm:$0xff]  ;;  %v465_v21 = vld [vmem:[#allocation2 + $0x2e0] sm:$0xff]  ;;  %v1125_v63 = vld [vmem:[%s1157_s1 + $0x8] sm:$0x3]  ;;  %s1009_s1 = smov [#allocation5]  }
 0x21e   :  { %v241_v11 = vmul.f32 %v942_v34, %v225_v9  ;;  %v240_v12 = vmul.f32 %v938_v32, %v224_v10  ;;  %v243_v15 = vmul.f32 %v940_v33, %v227_v13  ;;  %v242_v17 = vmul.f32 %v944_v35, %v226_v14  ;;  %v431_v24 = vld [vmem:[#allocation2 + $0x1d0] sm:$0xff]  ;;  %580 = vmatpush.msra.mxu2 %v467_v23  ;;  %v401_v32 = vld [vmem:[#allocation2 + $0xe0] sm:$0xff]  ;;  %v404_v9 = vld [vmem:[#allocation2 + $0xf8] sm:$0xff]  ;;  %s909_s10 = sshll.u32 %s1009_s1, 4  ;;  %s910_s10 = int_to_ptr.vmem [resolvable:$true] %s909_s10 }
 0x21f   :  { %251 = vperm.xlu0 %926, %v237_v2   ;;  %246 = vperm.xlu1 %927, %v236_v3   ;;  %v499_v31 = vld [vmem:[#allocation2 + $0x3f0] sm:$0xff]  ;;  %v497_v34 = vld [vmem:[#allocation2 + $0x3e0] sm:$0xff]  ;;  %v340_v3 = vmul.f32 %v1125_v63, %v1125_v63  ;;  %v402_v13 = vld [vmem:[#allocation2 + $0xe8] sm:$0xff] }
 0x220   :  { %581 = vmatpush.msra.mxu2 %v465_v21  ;;  %562 = vmatpush.msra.mxu1 %v431_v24  ;;  %v427_v33 = vld [vmem:[#allocation2 + $0x1b0] sm:$0xff]  ;;  %v409_v2 = vld [vmem:[#allocation2 + $0x120] sm:$0xff]  ;;  %v398_v21 = vld [vmem:[#allocation2 + $0xc8] sm:$0xff] }
 0x221   :  { %600 = vmatpush.msra.mxu3 %v499_v31  ;;  %v399_v35 = vld [vmem:[#allocation2 + $0xd0] sm:$0xff]  ;;  %541 = vmatpush.msra.mxu0 %v401_v32  ;;  %v405_v36 = vld [vmem:[#allocation2 + $0x100] sm:$0xff]  ;;  %v436_v31 = vld [vmem:[#allocation2 + $0x1f8] sm:$0xff] }
 0x222   :  { %582 = vmatpush.msra.mxu2 %v463_v25  ;;  %563 = vmatpush.msra.mxu1 %v429_v26  ;;  %v411_v1 = vld [vmem:[#allocation2 + $0x130] sm:$0xff]  ;;  %v441_v14 = vld [vmem:[#allocation2 + $0x220] sm:$0xff] }
 0x223   :  { %601 = vmatpush.msra.mxu3 %v497_v34  ;;  %542 = vmatpush.msra.mxu0 %v399_v35  ;;  %v407_v4 = vld [vmem:[#allocation2 + $0x110] sm:$0xff]  ;;  %v381_v24 = vld [vmem:[#allocation2 + $0x40] sm:$0xff]  ;;  %v394_v34 = vld [vmem:[#allocation2 + $0xa8] sm:$0xff] }
 0x224   :  { %583 = vmatpush.msra.mxu2 %v461_v30  ;;  %564 = vmatpush.msra.mxu1 %v427_v33  ;;  %v443_v10 = vld [vmem:[#allocation2 + $0x230] sm:$0xff]  ;;  %v437_v25 = vld [vmem:[#allocation2 + $0x200] sm:$0xff]  ;;  %v396_v30 = vld [vmem:[#allocation2 + $0xb8] sm:$0xff] }
 0x225   :  { %602 = vmatpush.msra.mxu3 %v495_v38  ;;  %543 = vmatpush.msra.mxu0 %v397_v40  ;;  %v479_v23 = vld [vmem:[#allocation2 + $0x350] sm:$0xff]  ;;  %v477_v26 = vld [vmem:[#allocation2 + $0x340] sm:$0xff]  ;;  %v434_v35 = vld [vmem:[#allocation2 + $0x1e8] sm:$0xff] }
 0x226   :  { %584 = vmatpush.msra.mxu2 %v459_v37  ;;  %565 = vmatpush.msra.mxu1 %v425_v39  ;;  %v475_v32 = vld [vmem:[#allocation2 + $0x330] sm:$0xff]  ;;  %v377_v33 = vld [vmem:[#allocation2 + $0x20] sm:$0xff]  ;;  %v392_v39 = vld [vmem:[#allocation2 + $0x98] sm:$0xff] }
 0x227   :  { %261 = vperm.xlu0 %926, %v239_v5   ;;  %256 = vperm.xlu1 %927, %v238_v8   ;;  %v342_v5 = vsel %vm341_vm8, %v340_v3, 0.0  ;;  %v387_v8 = vld [vmem:[#allocation2 + $0x70] sm:$0xff]  ;;  %v473_v37 = vld [vmem:[#allocation2 + $0x320] sm:$0xff]  ;;  %v432_v40 = vld [vmem:[#allocation2 + $0x1d8] sm:$0xff] }
 0x228   :  { %585 = vmatpush.msra.mxu2 %v457_v41  ;;  %603 = vmatpush.msra.mxu3 %v493_v42  ;;  %v375_v38 = vld [vmem:[#allocation2 + $0x10] sm:$0xff]  ;;  %v373_v42 = vld [vmem:[#allocation2] sm:$0xff]  ;;  %v458_v3 = vld [vmem:[#allocation2 + $0x2a8] sm:$0xff] }
 0x229   :  { %566 = vmatpush.msra.mxu1 %v423_v43  ;;  %544 = vmatpush.msra.mxu0 %v395_v44  ;;  %v471_v41 = vld [vmem:[#allocation2 + $0x310] sm:$0xff]  ;;  %v390_v43 = vld [vmem:[#allocation2 + $0x88] sm:$0xff] }
 0x22a   :  { %586 = vmatpush.msra.mxu2 %v455_v45  ;;  %604 = vmatpush.msra.mxu3 %v491_v46  ;;  %v430_v44 = vld [vmem:[#allocation2 + $0x1c8] sm:$0xff]  ;;  %v469_v45 = vld [vmem:[#allocation2 + $0x300] sm:$0xff]  ;;  %v388_v46 = vld [vmem:[#allocation2 + $0x78] sm:$0xff] }
 0x22b   :  { %567 = vmatpush.msra.mxu1 %v421_v47  ;;  %545 = vmatpush.msra.mxu0 %v393_v48  ;;  %v428_v47 = vld [vmem:[#allocation2 + $0x1b8] sm:$0xff] }
 0x22c   :  { %587 = vmatpush.msra.mxu2 %v453_v49  ;;  %605 = vmatpush.msra.mxu3 %v489_v50  ;;  %v468_v48 = vld [vmem:[#allocation2 + $0x2f8] sm:$0xff]  ;;  %v386_v49 = vld [vmem:[#allocation2 + $0x68] sm:$0xff] }
 0x22d   :  { %568 = vmatpush.msra.mxu1 %v419_v51  ;;  %546 = vmatpush.msra.mxu0 %v391_v52  ;;  %v426_v50 = vld [vmem:[#allocation2 + $0x1a8] sm:$0xff]  ;;  %v384_v52 = vld [vmem:[#allocation2 + $0x58] sm:$0xff] }
 0x22e   :  { %588 = vmatpush.msra.mxu2 %v451_v53  ;;  %606 = vmatpush.msra.mxu3 %v487_v54  ;;  %v466_v51 = vld [vmem:[#allocation2 + $0x2e8] sm:$0xff]  ;;  %v424_v53 = vld [vmem:[#allocation2 + $0x198] sm:$0xff] }
 0x22f   :  { %271 = vperm.xlu0 %926, %v241_v11   ;;  %266 = vperm.xlu1 %927, %v240_v12   ;;  %v483_v11 = vld [vmem:[#allocation2 + $0x370] sm:$0xff]  ;;  %v385_v12 = vld [vmem:[#allocation2 + $0x60] sm:$0xff]  ;;  %v464_v54 = vld [vmem:[#allocation2 + $0x2d8] sm:$0xff] }
 0x230   :  { %569 = vmatpush.msra.mxu1 %v417_v55  ;;  %547 = vmatpush.msra.mxu0 %v389_v56  ;;  %v382_v55 = vld [vmem:[#allocation2 + $0x48] sm:$0xff] }
 0x231   :  { %589 = vmatpush.msra.mxu2 %v449_v57  ;;  %607 = vmatpush.msra.mxu3 %v485_v58  ;;  %v422_v56 = vld [vmem:[#allocation2 + $0x188] sm:$0xff]  ;;  %v380_v58 = vld [vmem:[#allocation2 + $0x38] sm:$0xff] }
 0x232   :  { %570 = vmatpush.msra.mxu1 %v415_v59  ;;  %548 = vmatpush.msra.mxu0 %v387_v8  ;;  %v462_v57 = vld [vmem:[#allocation2 + $0x2c8] sm:$0xff]  ;;  %v420_v59 = vld [vmem:[#allocation2 + $0x178] sm:$0xff] }
 0x233   :  { %590 = vmatpush.msra.mxu2 %v447_v60  ;;  %608 = vmatpush.msra.mxu3 %v483_v11  ;;  %v460_v60 = vld [vmem:[#allocation2 + $0x2b8] sm:$0xff] }
 0x234   :  { %571 = vmatpush.msra.mxu1 %v413_v61  ;;  %549 = vmatpush.msra.mxu0 %v385_v12  ;;  %v416_v8 = vld [vmem:[#allocation2 + $0x158] sm:$0xff]  ;;  %v374_v12 = vld [vmem:[#allocation2 + $0x8] sm:$0xff] }
 0x235   :  { %591 = vmatpush.msra.mxu2 %v445_v62 }
 0x236   :  { %572 = vmatpush.msra.mxu1 %v411_v1  ;;  %v378_v1 = vld [vmem:[#allocation2 + $0x28] sm:$0xff] }
 0x237   :  { %281 = vperm.xlu0 %926, %v243_v15   ;;  %276 = vperm.xlu1 %927, %v242_v17   ;;  %v481_v15 = vld [vmem:[#allocation2 + $0x360] sm:$0xff]  ;;  %v383_v17 = vld [vmem:[#allocation2 + $0x50] sm:$0xff] }
 0x238   :  { %573 = vmatpush.msra.mxu1 %v409_v2  ;;  %592 = vmatpush.msra.mxu2 %v443_v10  ;;  %v418_v2 = vld [vmem:[#allocation2 + $0x168] sm:$0xff] }
 0x239   :  { %609 = vmatpush.msra.mxu3 %v481_v15  ;;  %550 = vmatpush.msra.mxu0 %v383_v17  ;;  %v452_v15 = vld [vmem:[#allocation2 + $0x278] sm:$0xff] }
 0x23a   :  { %574 = vmatpush.msra.mxu1 %v407_v4  ;;  %593 = vmatpush.msra.mxu2 %v441_v14  ;;  %v454_v14 = vld [vmem:[#allocation2 + $0x288] sm:$0xff] }
 0x23b   :  { %610 = vmatpush.msra.mxu3 %v479_v23  ;;  %551 = vmatpush.msra.mxu0 %v381_v24  ;;  %v529_v23 = vld [vmem:[#allocation2 + $0x4e0] sm:$0xff] }
 0x23c   :  { %575 = vmatpush.msra.mxu1 %v405_v36  ;;  %594 = vmatpush.msra.mxu2 %v439_v22  ;;  %v450_v22 = vld [vmem:[#allocation2 + $0x268] sm:$0xff] }
 0x23d   :  { %611 = vmatpush.msra.mxu3 %v477_v26  ;;  %552 = vmatpush.msra.mxu0 %v379_v28 }
 0x23e   :  { %640 = vmatpush.msrb.mxu1 %v404_v9  ;;  %595 = vmatpush.msra.mxu2 %v437_v25  ;;  %v456_v9 = vld [vmem:[#allocation2 + $0x298] sm:$0xff]  ;;  %v410_v25 = vld [vmem:[#allocation2 + $0x128] sm:$0xff] }
 0x23f   :  { %612 = vmatpush.msra.mxu3 %v475_v32  ;;  %553 = vmatpush.msra.mxu0 %v377_v33 }
 0x240   :  { %641 = vmatpush.msrb.mxu1 %v402_v13  ;;  %660 = vmatpush.msrb.mxu2 %v436_v31  ;;  %v414_v13 = vld [vmem:[#allocation2 + $0x148] sm:$0xff]  ;;  %v527_v31 = vld [vmem:[#allocation2 + $0x4d0] sm:$0xff] }
 0x241   :  { %613 = vmatpush.msra.mxu3 %v473_v37  ;;  %554 = vmatpush.msra.mxu0 %v375_v38  ;;  %v408_v37 = vld [vmem:[#allocation2 + $0x118] sm:$0xff]  ;;  %v525_v38 = vld [vmem:[#allocation2 + $0x4c0] sm:$0xff] }
 0x242   :  { %642 = vmatpush.msrb.mxu1 %v400_v18  ;;  %661 = vmatpush.msrb.mxu2 %v434_v35 }
 0x243   :  { %614 = vmatpush.msra.mxu3 %v471_v41  ;;  %555 = vmatpush.msra.mxu0 %v373_v42 }
 0x244   :  { %643 = vmatpush.msrb.mxu1 %v398_v21  ;;  %662 = vmatpush.msrb.mxu2 %v432_v40 }
 0x245   :  { %615 = vmatpush.msra.mxu3 %v469_v45  ;;  %v523_v45 = vld [vmem:[#allocation2 + $0x4b0] sm:$0xff] }
 0x246   :  { %644 = vmatpush.msrb.mxu1 %v396_v30  ;;  %663 = vmatpush.msrb.mxu2 %v430_v44  ;;  %v448_v30 = vld [vmem:[#allocation2 + $0x258] sm:$0xff]  ;;  %v406_v44 = vld [vmem:[#allocation2 + $0x108] sm:$0xff] }
 0x247   :  { %680 = vmatpush.msrb.mxu3 %v468_v48 }
 0x248   :  { %645 = vmatpush.msrb.mxu1 %v394_v34  ;;  %664 = vmatpush.msrb.mxu2 %v428_v47 }
 0x249   :  { %681 = vmatpush.msrb.mxu3 %v466_v51 }
 0x24a   :  { %646 = vmatpush.msrb.mxu1 %v392_v39  ;;  %665 = vmatpush.msrb.mxu2 %v426_v50  ;;  %v446_v39 = vld [vmem:[#allocation2 + $0x248] sm:$0xff] }
 0x24b   :  { %682 = vmatpush.msrb.mxu3 %v464_v54 }
 0x24c   :  { %647 = vmatpush.msrb.mxu1 %v390_v43  ;;  %666 = vmatpush.msrb.mxu2 %v424_v53  ;;  %v521_v53 = vld [vmem:[#allocation2 + $0x4a0] sm:$0xff] }
 0x24d   :  { %683 = vmatpush.msrb.mxu3 %v462_v57 }
 0x24e   :  { %648 = vmatpush.msrb.mxu1 %v388_v46  ;;  %667 = vmatpush.msrb.mxu2 %v422_v56  ;;  %v444_v46 = vld [vmem:[#allocation2 + $0x238] sm:$0xff] }
 0x24f   :  { %684 = vmatpush.msrb.mxu3 %v460_v60  ;;  %v440_v56 = vld [vmem:[#allocation2 + $0x218] sm:$0xff] }
 0x250   :  { %649 = vmatpush.msrb.mxu1 %v386_v49  ;;  %668 = vmatpush.msrb.mxu2 %v420_v59  ;;  %v442_v49 = vld [vmem:[#allocation2 + $0x228] sm:$0xff] }
 0x251   :  { %685 = vmatpush.msrb.mxu3 %v458_v3 }
 0x252   :  { %650 = vmatpush.msrb.mxu1 %v384_v52  ;;  %669 = vmatpush.msrb.mxu2 %v418_v2 }
 0x253   :  { %686 = vmatpush.msrb.mxu3 %v456_v9 }
 0x254   :  { %651 = vmatpush.msrb.mxu1 %v382_v55  ;;  %670 = vmatpush.msrb.mxu2 %v416_v8 }
 0x255   :  { %687 = vmatpush.msrb.mxu3 %v454_v14  ;;  %v513_v14 = vld [vmem:[#allocation2 + $0x460] sm:$0xff] }
 0x256   :  { %652 = vmatpush.msrb.mxu1 %v380_v58  ;;  %671 = vmatpush.msrb.mxu2 %v414_v13 }
 0x257   :  { %688 = vmatpush.msrb.mxu3 %v452_v15 }
 0x258   :  { %653 = vmatpush.msrb.mxu1 %v378_v1 }
 0x259   :  { %689 = vmatpush.msrb.mxu3 %v450_v22 }
 0x25b   :  { %690 = vmatpush.msrb.mxu3 %v448_v30 }
 0x25d   :  { %691 = vmatpush.msrb.mxu3 %v446_v39 }
 0x25f   :  { %692 = vmatpush.msrb.mxu3 %v444_v46 }
 0x261   :  { %343 = vadd.xlane.f32.xlu1 %v342_v5  ;;  %v376_v5 = vld [vmem:[#allocation2 + $0x18] sm:$0xff]  ;;  %693 = vmatpush.msrb.mxu3 %v442_v49 }
 0x262   :  { %654 = vmatpush.msrb.mxu1 %v376_v5 }
 0x263   :  { %694 = vmatpush.msrb.mxu3 %v440_v56  ;;  %v492_v56 = vld [vmem:[#allocation2 + $0x3b8] sm:$0xff] }
 0x264   :  { %655 = vmatpush.msrb.mxu1 %v374_v12 }
 0x291   :  { %v252_v61 = vpop.permute.xlu0 %251  ;;  %v247_v62 = vpop.permute.xlu1 %246 }
 0x292   :  { %v285_v4 = vmul.f32 %v252_v61, %v1057_v16  ;;  %v284_v36 = vmul.f32 %v247_v62, %v1036_v0  ;;  %v412_v0 = vld [vmem:[#allocation2 + $0x138] sm:$0xff]  ;;  %v531_v16 = vld [vmem:[#allocation2 + $0x4f0] sm:$0xff]  ;;  %v438_v62 = vld [vmem:[#allocation2 + $0x208] sm:$0xff] }
 0x293   :  { %620 = vmatpush.msrb.mxu0 %v531_v16  ;;  %672 = vmatpush.msrb.mxu2 %v412_v0  ;;  %v519_v61 = vld [vmem:[#allocation2 + $0x490] sm:$0xff] }
 0x294   :  { %v298_v10 = vrot.slane %v285_v4, 4  ;;  %v292_v11 = vrot.slane %v284_v36, 4  ;;  %695 = vmatpush.msrb.mxu3 %v438_v62  ;;  %v486_v62 = vld [vmem:[#allocation2 + $0x388] sm:$0xff] }
 0x295   :  { %621 = vmatpush.msrb.mxu0 %v529_v23  ;;  %673 = vmatpush.msrb.mxu2 %v410_v25 }
 0x296   :  { %v299_v17 = vadd.f32 %v298_v10, %v285_v4  ;;  %v293_v18 = vadd.f32 %v292_v11, %v284_v36  ;;  %v517_v36 = vld [vmem:[#allocation2 + $0x480] sm:$0xff]  ;;  %v515_v11 = vld [vmem:[#allocation2 + $0x470] sm:$0xff] }
 0x297   :  { %622 = vmatpush.msrb.mxu0 %v527_v31  ;;  %674 = vmatpush.msrb.mxu2 %v408_v37  ;;  %v509_v31 = vld [vmem:[#allocation2 + $0x440] sm:$0xff] }
 0x298   :  { %v300_v24 = vrot.slane %v299_v17, 2  ;;  %v294_v21 = vrot.slane %v293_v18, 2 }
 0x299   :  { %v262_v26 = vpop.permute.xlu0 %261  ;;  %v257_v28 = vpop.permute.xlu1 %256  ;;  %623 = vmatpush.msrb.mxu0 %v525_v38  ;;  %675 = vmatpush.msrb.mxu2 %v406_v44  ;;  %v503_v44 = vld [vmem:[#allocation2 + $0x410] sm:$0xff] }
 0x29a   :  { %v301_v32 = vadd.f32 %v300_v24, %v299_v17  ;;  %v295_v33 = vadd.f32 %v294_v21, %v293_v18  ;;  %v287_v34 = vmul.f32 %v262_v26, %v1062_v19  ;;  %v286_v35 = vmul.f32 %v257_v28, %v1044_v6  ;;  %v530_v18 = vld [vmem:[#allocation2 + $0x4e8] sm:$0xff]  ;;  %v511_v24 = vld [vmem:[#allocation2 + $0x450] sm:$0xff]  ;;  %v528_v21 = vld [vmem:[#allocation2 + $0x4d8] sm:$0xff] }
 0x29b   :  { %624 = vmatpush.msrb.mxu0 %v523_v45 }
 0x29c   :  { %v302_v40 = vrot.slane %v301_v32, 1  ;;  %v296_v41 = vrot.slane %v295_v33, 1  ;;  %v310_v42 = vrot.slane %v287_v34, 4  ;;  %v304_v43 = vrot.slane %v286_v35, 4 }
 0x29d   :  { %625 = vmatpush.msrb.mxu0 %v521_v53  ;;  %v520_v53 = vld [vmem:[#allocation2 + $0x498] sm:$0xff] }
 0x29e   :  { %v311_v47 = vadd.f32 %v310_v42, %v287_v34  ;;  %v305_v19 = vadd.f32 %v304_v43, %v286_v35  ;;  %v297_v48 = vadd.f32 %v296_v41, %v295_v33  ;;  %v303_v6 = vadd.f32 %v302_v40, %v301_v32  ;;  %v526_v32 = vld [vmem:[#allocation2 + $0x4c8] sm:$0xff]  ;;  %v505_v41 = vld [vmem:[#allocation2 + $0x420] sm:$0xff] }
 0x29f   :  { %626 = vmatpush.msrb.mxu0 %v519_v61  ;;  %v512_v61 = vld [vmem:[#allocation2 + $0x458] sm:$0xff] }
 0x2a0   :  { %v312_v50 = vrot.slane %v311_v47, 2  ;;  %v306_v51 = vrot.slane %v305_v19, 2  ;;  %v1135_v52 = vsel %vm107_vm0, %v303_v6, %v297_v48  ;;  %v500_v6 = vld [vmem:[#allocation2 + $0x3f8] sm:$0xff] }
 0x2a1   :  { %v272_v54 = vpop.permute.xlu0 %271  ;;  %556 = vmatmul.f32.vlgmr.msra.gmra.mxu0 %v1135_v52  ;;  %v267_v55 = vpop.permute.xlu1 %266 }
 0x2a2   :  { %v313_v57 = vadd.f32 %v312_v50, %v311_v47  ;;  %v307_v58 = vadd.f32 %v306_v51, %v305_v19  ;;  %v289_v59 = vmul.f32 %v272_v54, %v1067_v20  ;;  %v288_v60 = vmul.f32 %v267_v55, %v1049_v7  ;;  %627 = vmatpush.msrb.mxu0 %v517_v36  ;;  %v532_v20 = vld [vmem:[#allocation2 + $0x4f8] sm:$0xff]  ;;  %v501_v47 = vld [vmem:[#allocation2 + $0x400] sm:$0xff]  ;;  %v498_v50 = vld [vmem:[#allocation2 + $0x3e8] sm:$0xff] }
 0x2a3   :  { %v522_v51 = vld [vmem:[#allocation2 + $0x4a8] sm:$0xff] }
 0x2a4   :  { %v314_v1 = vrot.slane %v313_v57, 1  ;;  %v308_v2 = vrot.slane %v307_v58, 1  ;;  %v322_v3 = vrot.slane %v289_v59, 4  ;;  %v316_v4 = vrot.slane %v288_v60, 4  ;;  %628 = vmatpush.msrb.mxu0 %v515_v11  ;;  %v494_v54 = vld [vmem:[#allocation2 + $0x3c8] sm:$0xff]  ;;  %v476_v11 = vld [vmem:[#allocation2 + $0x338] sm:$0xff] }
 0x2a5   :  { %v518_v55 = vld [vmem:[#allocation2 + $0x488] sm:$0xff] }
 0x2a6   :  { %v323_v5 = vadd.f32 %v322_v3, %v289_v59  ;;  %v317_v8 = vadd.f32 %v316_v4, %v288_v60  ;;  %v309_v9 = vadd.f32 %v308_v2, %v307_v58  ;;  %v315_v10 = vadd.f32 %v314_v1, %v313_v57  ;;  %629 = vmatpush.msrb.mxu0 %v513_v14  ;;  %v516_v57 = vld [vmem:[#allocation2 + $0x478] sm:$0xff]  ;;  %v490_v58 = vld [vmem:[#allocation2 + $0x3a8] sm:$0xff] }
 0x2a7   :  { %v514_v59 = vld [vmem:[#allocation2 + $0x468] sm:$0xff]  ;;  %v488_v60 = vld [vmem:[#allocation2 + $0x398] sm:$0xff] }
 0x2a8   :  { %v324_v7 = vrot.slane %v323_v5, 2  ;;  %v318_v12 = vrot.slane %v317_v8, 2  ;;  %v363_v13 = vsel %vm107_vm0, %v315_v10, %v309_v9  ;;  %630 = vmatpush.msrb.mxu0 %v511_v24  ;;  %v510_v1 = vld [vmem:[#allocation2 + $0x448] sm:$0xff]  ;;  %v484_v2 = vld [vmem:[#allocation2 + $0x378] sm:$0xff] }
 0x2a9   :  { %v282_v15 = vpop.permute.xlu0 %281  ;;  %576 = vmatmul.f32.vlgmr.msra.gmra.mxu1 %v363_v13  ;;  %v277_v17 = vpop.permute.xlu1 %276  ;;  %v508_v3 = vld [vmem:[#allocation2 + $0x438] sm:$0xff]  ;;  %v482_v4 = vld [vmem:[#allocation2 + $0x368] sm:$0xff] }
 0x2aa   :  { %v325_v0 = vadd.f32 %v324_v7, %v323_v5  ;;  %v319_v16 = vadd.f32 %v318_v12, %v317_v8  ;;  %v291_v22 = vmul.f32 %v282_v15, %v1080_v29  ;;  %v290_v23 = vmul.f32 %v277_v17, %v1075_v27  ;;  %720 = vmatpush.msra.mxu1 %v532_v20  ;;  %v507_v29 = vld [vmem:[#allocation2 + $0x430] sm:$0xff]  ;;  %v524_v27 = vld [vmem:[#allocation2 + $0x4b8] sm:$0xff]  ;;  %v506_v36 = vld [vmem:[#allocation2 + $0x428] sm:$0xff] }
 0x2ab   :  { %631 = vmatpush.msrb.mxu0 %v509_v31  ;;  %v480_v5 = vld [vmem:[#allocation2 + $0x358] sm:$0xff]  ;;  %v478_v9 = vld [vmem:[#allocation2 + $0x348] sm:$0xff]  ;;  %v754_v31 = vld [vmem:[#allocation2 + $0x5c0] sm:$0xff] }
 0x2ac   :  { %v326_v25 = vrot.slane %v325_v0, 1  ;;  %v320_v26 = vrot.slane %v319_v16, 1  ;;  %v334_v28 = vrot.slane %v291_v22, 4  ;;  %v328_v30 = vrot.slane %v290_v23, 4  ;;  %721 = vmatpush.msra.mxu1 %v530_v18  ;;  %v504_v8 = vld [vmem:[#allocation2 + $0x418] sm:$0xff]  ;;  %v502_v10 = vld [vmem:[#allocation2 + $0x408] sm:$0xff] }
 0x2ad   :  { %632 = vmatpush.msrb.mxu0 %v507_v29  ;;  %v474_v20 = vld [vmem:[#allocation2 + $0x328] sm:$0xff]  ;;  %v472_v7 = vld [vmem:[#allocation2 + $0x318] sm:$0xff]  ;;  %v768_v29 = vld [vmem:[#allocation2 + $0x6a0] sm:$0xff] }
 0x2ae   :  { %v335_v33 = vadd.f32 %v334_v28, %v291_v22  ;;  %v329_v34 = vadd.f32 %v328_v30, %v290_v23  ;;  %v321_v35 = vadd.f32 %v320_v26, %v319_v16  ;;  %v327_v37 = vadd.f32 %v326_v25, %v325_v0  ;;  %722 = vmatpush.msra.mxu1 %v528_v21  ;;  %v470_v14 = vld [vmem:[#allocation2 + $0x308] sm:$0xff]  ;;  %v757_v21 = vld [vmem:[#allocation2 + $0x5f0] sm:$0xff]  ;;  %v756_v25 = vld [vmem:[#allocation2 + $0x5e0] sm:$0xff] }
 0x2af   :  { %633 = vmatpush.msrb.mxu0 %v505_v41  ;;  %v755_v26 = vld [vmem:[#allocation2 + $0x5d0] sm:$0xff]  ;;  %v772_v30 = vld [vmem:[#allocation2 + $0x6e0] sm:$0xff] }
 0x2b0   :  { %v336_v38 = vrot.slane %v335_v33, 2  ;;  %v330_v39 = vrot.slane %v329_v34, 2  ;;  %v367_v40 = vsel %vm107_vm0, %v327_v37, %v321_v35  ;;  %723 = vmatpush.msra.mxu1 %v526_v32  ;;  %v773_v28 = vld [vmem:[#allocation2 + $0x6f0] sm:$0xff]  ;;  %v748_v41 = vld [vmem:[#allocation2 + $0x560] sm:$0xff] }
 0x2b1   :  { %596 = vmatmul.f32.vlgmr.msra.gmra.mxu2 %v367_v40  ;;  %656 = vmatmul.f32.vlgmr.msrb.gmra.mxu1 %v1135_v52  ;;  %v496_v52 = vld [vmem:[#allocation2 + $0x3d8] sm:$0xff]  ;;  %v771_v32 = vld [vmem:[#allocation2 + $0x6d0] sm:$0xff] }
 0x2b2   :  { %v337_v42 = vadd.f32 %v336_v38, %v335_v33  ;;  %v331_v43 = vadd.f32 %v330_v39, %v329_v34  ;;  %724 = vmatpush.msra.mxu1 %v524_v27  ;;  %634 = vmatpush.msrb.mxu0 %v503_v44  ;;  %v753_v33 = vld [vmem:[#allocation2 + $0x5b0] sm:$0xff]  ;;  %v770_v34 = vld [vmem:[#allocation2 + $0x6c0] sm:$0xff] }
 0x2b3   :  { %775 = vmatpush.msra.mxu2 %v757_v21  ;;  %v769_v35 = vld [vmem:[#allocation2 + $0x6b0] sm:$0xff]  ;;  %v750_v27 = vld [vmem:[#allocation2 + $0x580] sm:$0xff] }
 0x2b4   :  { %v338_v45 = vrot.slane %v337_v42, 1  ;;  %v332_v46 = vrot.slane %v331_v43, 1  ;;  %635 = vmatpush.msrb.mxu0 %v501_v47  ;;  %725 = vmatpush.msra.mxu1 %v522_v51  ;;  %v751_v37 = vld [vmem:[#allocation2 + $0x590] sm:$0xff]  ;;  %v760_v51 = vld [vmem:[#allocation2 + $0x620] sm:$0xff] }
 0x2b5   :  { %776 = vmatpush.msra.mxu2 %v756_v25  ;;  %v767_v38 = vld [vmem:[#allocation2 + $0x690] sm:$0xff]  ;;  %v823_v25 = vld [vmem:[#allocation2 + $0x578] sm:$0xff] }
 0x2b6   :  { %v333_v19 = vadd.f32 %v332_v46, %v331_v43  ;;  %v339_v48 = vadd.f32 %v338_v45, %v337_v42  ;;  %700 = vmatpush.msra.mxu0 %v500_v6  ;;  %726 = vmatpush.msra.mxu1 %v520_v53  ;;  %v749_v39 = vld [vmem:[#allocation2 + $0x570] sm:$0xff]  ;;  %v746_v43 = vld [vmem:[#allocation2 + $0x540] sm:$0xff]  ;;  %v831_v53 = vld [vmem:[#allocation2 + $0x5f8] sm:$0xff] }
 0x2b7   :  { %777 = vmatpush.msra.mxu2 %v755_v26  ;;  %v747_v42 = vld [vmem:[#allocation2 + $0x550] sm:$0xff]  ;;  %v744_v45 = vld [vmem:[#allocation2 + $0x520] sm:$0xff]  ;;  %v822_v26 = vld [vmem:[#allocation2 + $0x568] sm:$0xff] }
 0x2b8   :  { %v1146_v49 = vsel %vm107_vm0, %v339_v48, %v333_v19  ;;  %701 = vmatpush.msra.mxu0 %v498_v50  ;;  %727 = vmatpush.msra.mxu1 %v518_v55  ;;  %v745_v44 = vld [vmem:[#allocation2 + $0x530] sm:$0xff]  ;;  %v764_v19 = vld [vmem:[#allocation2 + $0x660] sm:$0xff] }
 0x2b9   :  { %616 = vmatmul.f32.vlgmr.msra.gmra.mxu3 %v1146_v49  ;;  %676 = vmatmul.f32.vlgmr.msrb.gmra.mxu2 %v363_v13  ;;  %v765_v46 = vld [vmem:[#allocation2 + $0x670] sm:$0xff]  ;;  %v742_v48 = vld [vmem:[#allocation2 + $0x500] sm:$0xff] }
 0x2ba   :  { %702 = vmatpush.msra.mxu0 %v496_v52  ;;  %728 = vmatpush.msra.mxu1 %v516_v57  ;;  %v743_v47 = vld [vmem:[#allocation2 + $0x510] sm:$0xff]  ;;  %v758_v55 = vld [vmem:[#allocation2 + $0x600] sm:$0xff] }
 0x2bb   :  { %795 = vmatpush.msra.mxu3 %v773_v28  ;;  %778 = vmatpush.msra.mxu2 %v754_v31  ;;  %v763_v6 = vld [vmem:[#allocation2 + $0x650] sm:$0xff]  ;;  %v534_v57 = vld [vmem:[#allocation2 + $0x700] ss:$8 sm:$0x3]  ;;  %v821_v28 = vld [vmem:[#allocation2 + $0x558] sm:$0xff] }
 0x2bc   :  { %703 = vmatpush.msra.mxu0 %v494_v54  ;;  %729 = vmatpush.msra.mxu1 %v514_v59  ;;  %v761_v50 = vld [vmem:[#allocation2 + $0x630] sm:$0xff]  ;;  %v830_v54 = vld [vmem:[#allocation2 + $0x5e8] sm:$0xff]  ;;  %v536_v59 = vperm.slane %v534_v57, 0  ;;  %v819_v31 = vld [vmem:[#allocation2 + $0x538] sm:$0xff] }
 0x2bd   :  { %796 = vmatpush.msra.mxu3 %v772_v30  ;;  %779 = vmatpush.msra.mxu2 %v753_v33  ;;  %v759_v52 = vld [vmem:[#allocation2 + $0x610] sm:$0xff]  ;;  %v820_v30 = vld [vmem:[#allocation2 + $0x548] sm:$0xff]  ;;  %v817_v33 = vld [vmem:[#allocation2 + $0x518] sm:$0xff] }
 0x2be   :  { %704 = vmatpush.msra.mxu0 %v492_v56  ;;  %730 = vmatpush.msra.mxu1 %v512_v61  ;;  %v829_v56 = vld [vmem:[#allocation2 + $0x5d8] sm:$0xff] }
 0x2bf   :  { %797 = vmatpush.msra.mxu3 %v771_v32  ;;  %v818_v32 = vld [vmem:[#allocation2 + $0x528] sm:$0xff] }
 0x2c0   :  { %705 = vmatpush.msra.mxu0 %v490_v58  ;;  %731 = vmatpush.msra.mxu1 %v510_v1  ;;  %v828_v58 = vld [vmem:[#allocation2 + $0x5c8] sm:$0xff] }
 0x2c1   :  { %696 = vmatmul.f32.vlgmr.msrb.gmra.mxu3 %v367_v40  ;;  %v766_v40 = vld [vmem:[#allocation2 + $0x680] sm:$0xff]  ;;  %v826_v1 = vld [vmem:[#allocation2 + $0x5a8] sm:$0xff] }
 0x2c2   :  { %706 = vmatpush.msra.mxu0 %v488_v60  ;;  %732 = vmatpush.msra.mxu1 %v508_v3  ;;  %v827_v60 = vld [vmem:[#allocation2 + $0x5b8] sm:$0xff] }
 0x2c3   :  { %798 = vmatpush.msra.mxu3 %v770_v34  ;;  %v816_v34 = vld [vmem:[#allocation2 + $0x508] sm:$0xff] }
 0x2c4   :  { %707 = vmatpush.msra.mxu0 %v486_v62  ;;  %733 = vmatpush.msra.mxu1 %v506_v36 }
 0x2c5   :  { %799 = vmatpush.msra.mxu3 %v769_v35  ;;  %v868_v35 = vld [vmem:[#allocation2 + $0x6e8] sm:$0xff] }
 0x2c6   :  { %708 = vmatpush.msra.mxu0 %v484_v2  ;;  %734 = vmatpush.msra.mxu1 %v504_v8  ;;  %v824_v8 = vld [vmem:[#allocation2 + $0x588] sm:$0xff] }
 0x2c7   :  { %800 = vmatpush.msra.mxu3 %v768_v29  ;;  %v866_v29 = vld [vmem:[#allocation2 + $0x6c8] sm:$0xff] }
 0x2c8   :  { %709 = vmatpush.msra.mxu0 %v482_v4  ;;  %735 = vmatpush.msra.mxu1 %v502_v10  ;;  %v825_v4 = vld [vmem:[#allocation2 + $0x598] sm:$0xff]  ;;  %v537_v10 = vperm.slane %v534_v57, 1  ;;  %v870_v57 = vld [vmem:[#allocation2 + $0x720] ss:$0 sm:$0xff] }
 0x2c9   :  { %801 = vmatpush.msra.mxu3 %v767_v38  ;;  %v864_v38 = vld [vmem:[#allocation2 + $0x6a8] sm:$0xff] }
 0x2ca   :  { %710 = vmatpush.msra.mxu0 %v480_v5 }
 0x2cb   :  { %802 = vmatpush.msra.mxu3 %v766_v40  ;;  %v862_v40 = vld [vmem:[#allocation2 + $0x688] sm:$0xff] }
 0x2cc   :  { %711 = vmatpush.msra.mxu0 %v478_v9 }
 0x2cd   :  { %803 = vmatpush.msra.mxu3 %v765_v46  ;;  %v774_v46 = vld [vmem:[#allocation2 + $0x710] ss:$0 sm:$0xff] }
 0x2ce   :  { %712 = vmatpush.msra.mxu0 %v476_v11 }
 0x2cf   :  { %804 = vmatpush.msra.mxu3 %v764_v19 }
 0x2d0   :  { %713 = vmatpush.msra.mxu0 %v474_v20 }
 0x2d1   :  { %805 = vmatpush.msra.mxu3 %v763_v6 }
 0x2d2   :  { %714 = vmatpush.msra.mxu0 %v472_v7 }
 0x2d4   :  { %v344_v12 = vpop.xlane.xlu1 %343  ;;  %715 = vmatpush.msra.mxu0 %v470_v14 }
 0x2d5   :  { %v345_v13 = vmax.f32 %v344_v12, 1e-24 }
 0x2d7   :  { %947 = vrsqrt.f32 %v345_v13  ;;  %vm352_vm10 = vweird.f32 %v345_v13 }
 0x2dd   :  { %v948_v15 = vpop.eup %947 }
 0x2de   :  { %v347_v17 = vmul.f32 %v948_v15, %v345_v13  ;;  %vm353_vm9 = vweird.f32 %v948_v15 }
 0x2df   :  { %vm354_vm11 = vmor %vm352_vm10, %vm353_vm9 }
 0x2e0   :  { %v348_v18 = vmul.f32 %v948_v15, %v347_v17 }
 0x2e2   :  { %v349_v0 = vmul.f32 0.5, %v348_v18 }
 0x2e4   :  { %v350_v16 = vsub.f32 1.5, %v349_v0 }
 0x2e6   :  { %v351_v22 = vmul.f32 %v948_v15, %v350_v16 }
 0x2e8   :  { %v355_v23 = vsel %vm354_vm11, %v948_v15, %v351_v22 }
 0x2e9   :  { %v356_v24 = vmul.f32 %v355_v23, %v1125_v63  ;;  %v752_v63 = vld [vmem:[#allocation2 + $0x5a0] sm:$0xff] }
 0x2ea   :  { %780 = vmatpush.msra.mxu2 %v752_v63  ;;  %v869_v63 = vld [vmem:[#allocation2 + $0x6f8] sm:$0xff] }
 0x2eb   :  { %636 = vmatmul.f32.vlgmr.msrb.gmra.mxu0 %v356_v24  ;;  %736 = vmatmul.f32.vlgmr.msra.gmra.mxu1 %v356_v24 }
 0x2ec   :  { %781 = vmatpush.msra.mxu2 %v751_v37  ;;  %833 = vmatpush.msrb.mxu0 %v831_v53  ;;  %v867_v37 = vld [vmem:[#allocation2 + $0x6d8] sm:$0xff] }
 0x2ed   :  { %871 = vmatpush.msrb.mxu1 %v869_v63  ;;  %v832_v53 = vld [vmem:[#allocation2 + $0x718] ss:$0 sm:$0xff] }
 0x2ee   :  { %782 = vmatpush.msra.mxu2 %v750_v27  ;;  %834 = vmatpush.msrb.mxu0 %v830_v54  ;;  %v865_v27 = vld [vmem:[#allocation2 + $0x6b8] sm:$0xff] }
 0x2ef   :  { %872 = vmatpush.msrb.mxu1 %v868_v35 }
 0x2f0   :  { %783 = vmatpush.msra.mxu2 %v749_v39  ;;  %835 = vmatpush.msrb.mxu0 %v829_v56  ;;  %v863_v39 = vld [vmem:[#allocation2 + $0x698] sm:$0xff] }
 0x2f1   :  { %873 = vmatpush.msrb.mxu1 %v867_v37 }
 0x2f2   :  { %784 = vmatpush.msra.mxu2 %v748_v41  ;;  %836 = vmatpush.msrb.mxu0 %v828_v58  ;;  %v861_v41 = vld [vmem:[#allocation2 + $0x678] sm:$0xff] }
 0x2f3   :  { %716 = vmatmul.f32.vlgmr.msra.gmra.mxu0 %v1146_v49  ;;  %v762_v49 = vld [vmem:[#allocation2 + $0x640] sm:$0xff]  ;;  %874 = vmatpush.msrb.mxu1 %v866_v29 }
 0x2f4   :  { %785 = vmatpush.msra.mxu2 %v747_v42  ;;  %806 = vmatpush.msra.mxu3 %v762_v49  ;;  %v860_v42 = vld [vmem:[#allocation2 + $0x668] sm:$0xff] }
 0x2f5   :  { %837 = vmatpush.msrb.mxu0 %v827_v60  ;;  %875 = vmatpush.msrb.mxu1 %v865_v27 }
 0x2f6   :  { %786 = vmatpush.msra.mxu2 %v746_v43  ;;  %807 = vmatpush.msra.mxu3 %v761_v50  ;;  %v859_v43 = vld [vmem:[#allocation2 + $0x658] sm:$0xff]  ;;  %v856_v50 = vld [vmem:[#allocation2 + $0x628] sm:$0xff] }
 0x2f7   :  { %838 = vmatpush.msrb.mxu0 %v826_v1  ;;  %876 = vmatpush.msrb.mxu1 %v864_v38 }
 0x2f8   :  { %787 = vmatpush.msra.mxu2 %v745_v44  ;;  %808 = vmatpush.msra.mxu3 %v760_v51  ;;  %v858_v44 = vld [vmem:[#allocation2 + $0x648] sm:$0xff]  ;;  %v855_v51 = vld [vmem:[#allocation2 + $0x618] sm:$0xff] }
 0x2f9   :  { %839 = vmatpush.msrb.mxu0 %v825_v4  ;;  %877 = vmatpush.msrb.mxu1 %v863_v39 }
 0x2fa   :  { %788 = vmatpush.msra.mxu2 %v744_v45  ;;  %809 = vmatpush.msra.mxu3 %v759_v52  ;;  %v857_v45 = vld [vmem:[#allocation2 + $0x638] sm:$0xff]  ;;  %v854_v52 = vld [vmem:[#allocation2 + $0x608] sm:$0xff] }
 0x2fb   :  { %840 = vmatpush.msrb.mxu0 %v824_v8  ;;  %878 = vmatpush.msrb.mxu1 %v862_v40 }
 0x2fc   :  { %789 = vmatpush.msra.mxu2 %v743_v47  ;;  %810 = vmatpush.msra.mxu3 %v758_v55 }
 0x2fd   :  { %841 = vmatpush.msrb.mxu0 %v823_v25  ;;  %879 = vmatpush.msrb.mxu1 %v861_v41 }
 0x2fe   :  { %790 = vmatpush.msra.mxu2 %v742_v48 }
 0x2ff   :  { %842 = vmatpush.msrb.mxu0 %v822_v26  ;;  %880 = vmatpush.msrb.mxu1 %v860_v42 }
 0x301   :  { %843 = vmatpush.msrb.mxu0 %v821_v28  ;;  %881 = vmatpush.msrb.mxu1 %v859_v43 }
 0x303   :  { %844 = vmatpush.msrb.mxu0 %v820_v30  ;;  %882 = vmatpush.msrb.mxu1 %v858_v44 }
 0x305   :  { %845 = vmatpush.msrb.mxu0 %v819_v31  ;;  %883 = vmatpush.msrb.mxu1 %v857_v45 }
 0x307   :  { %846 = vmatpush.msrb.mxu0 %v818_v32  ;;  %884 = vmatpush.msrb.mxu1 %v856_v50 }
 0x309   :  { %847 = vmatpush.msrb.mxu0 %v817_v33  ;;  %885 = vmatpush.msrb.mxu1 %v855_v51 }
 0x30b   :  { %848 = vmatpush.msrb.mxu0 %v816_v34  ;;  %886 = vmatpush.msrb.mxu1 %v854_v52 }
 0x31e   :  { %v557_v61 = vpop.f32.mrf.mxu0 }
 0x31f   :  { %v558_v3 = vadd.f32 %v557_v61, %v536_v59 }
 0x326   :  { %v577_v62 = vpop.f32.mrf.mxu1 }
 0x327   :  { %v578_v5 = vadd.f32 %v577_v62, %v558_v3 }
 0x32e   :  { %v657_v20 = vpop.f32.mrf.mxu1 }
 0x32f   :  { %v658_v14 = vadd.f32 %v657_v20, %v537_v10 }
 0x334   :  { %v597_v2 = vpop.f32.mrf.mxu2 }
 0x335   :  { %v598_v9 = vadd.f32 %v597_v2, %v578_v5 }
 0x33c   :  { %v617_v36 = vpop.f32.mrf.mxu3  ;;  %v677_v13 = vpop.f32.mrf.mxu2 }
 0x33d   :  { %v618_v11 = vadd.f32 %v617_v36, %v598_v9  ;;  %v678_v18 = vadd.f32 %v677_v13, %v658_v14 }
 0x344   :  { %v697_v17 = vpop.f32.mrf.mxu3 }
 0x345   :  { %v698_v0 = vadd.f32 %v697_v17, %v678_v18 }
 0x368   :  { %v637_v7 = vpop.f32.mrf.mxu0  ;;  %v737_v23 = vpop.f32.mrf.mxu1 }
 0x369   :  { %v638_v12 = vadd.f32 %v637_v7, %v618_v11 }
 0x36b   :  { %v740_v15 = vmax.f32 %v638_v12, 0.0 }
 0x36d   :  { %791 = vmatmul.f32.vlgmr.msra.gmra.mxu2 %v740_v15 }
 0x370   :  { %v717_v16 = vpop.f32.mrf.mxu0 }
 0x371   :  { %v718_v22 = vadd.f32 %v717_v16, %v698_v0 }
 0x373   :  { %v738_v24 = vadd.f32 %v737_v23, %v718_v22 }
 0x375   :  { %v741_v21 = vmax.f32 %v738_v24, 0.0 }
 0x377   :  { %811 = vmatmul.f32.vlgmr.msra.gmra.mxu3 %v741_v21 }
 0x3f0   :  { %v792_v47 = vpop.f32.mrf.mxu2 }
 0x3f1   :  { %v793_v19 = vadd.f32 %v792_v47, %v774_v46 }
 0x3fa   :  { %v812_v48 = vpop.f32.mrf.mxu3 }
 0x3fb   :  { %v813_v6 = vadd.f32 %v812_v48, %v793_v19 }
 0x3fd   :  { %v815_v49 = vmax.f32 %v813_v6, 0.0 }
 0x3ff   :  { %849 = vmatmul.f32.vlgmr.msrb.gmra.mxu0 %v815_v49 }
 0x47c   :  { %v850_v54 = vpop.f32.mrf.mxu0 }
 0x47d   :  { %v851_v55 = vadd.f32 %v850_v54, %v832_v53 }
 0x47f   :  { %v853_v56 = vmax.f32 %v851_v55, 0.0 }
 0x481   :  { %887 = vmatmul.f32.vlgmr.msrb.gmra.mxu1 %v853_v56 }
 0x4fe   :  { %v888_v58 = vpop.f32.mrf.mxu1 }
 0x4ff   :  { %v889_v59 = vadd.f32 %v888_v58, %v870_v57 }
 0x501   :  { %v891_v60 = vsel %vm341_vm8, %v889_v59, -inf }
 0x502   :  { %892 = vmax.xlane.f32.xlu0 %v891_v60 }
 0x575   :  { %v893_v61 = vpop.xlane.xlu0 %892 }
 0x576   :  { %v894_v62 = vsub.f32 %v889_v59, %v893_v61 }
 0x578   :  { %v895_v1 = vmul.f32 1.442695, %v894_v62 }
 0x57a   :  { %949 = vpow2.f32 %v895_v1 }
 0x580   :  { %v950_v2 = vpop.eup %949 }
 0x581   :  { %v897_v3 = vsel %vm341_vm8, %v950_v2, 0.0 }
 0x582   :  { %898 = vadd.xlane.f32.xlu2 %v897_v3 }
 0x5f5   :  { %v899_v4 = vpop.xlane.xlu2 %898 }
 0x5f6   :  { %951 = vlog2.f32 %v899_v4 }
 0x5fc   :  { %v952_v36 = vpop.eup %951 }
 0x5fd   :  { %v901_v5 = vmul.f32 0.6931472, %v952_v36 }
 0x5ff   :  { %v902_v8 = vsub.f32 %v894_v62, %v901_v5 }
 0x601   :  { %903 = vst [vmem:[#allocation5] sm:$0x3] %v902_v8 }
 0x602   :  { %914 = dma.vmem_to_hbm [thread:$0]  %s910_s10, 32, %s912_s13, [#allocation4]  }
 0x603   :  { %1003 = dma.done.wait [#allocation4], 32  }
 0x604   :  { %1004 = vsyncadd [#allocation4], 4294967264 }
 0x605   :  { %919 = vsyncpa [#allocation3], 1 }
 0x606   :  { %920 = vsyncpa [#allocation4], 1 }

</bundles_post_ra>
